<compile_context>
chip_gen: v7x
topology: tpu7x:2x2x1
jax: 0.10.0
libtpu: 0.0.40
codegen_flags: <defaults>
</compile_context>

<pallas_src>
import jax
import jax.numpy as jnp
from jax.experimental import pallas as pl
from jax.experimental.pallas import tpu as pltpu


def _lstm_seq_kernel(x_ref, h0_ref, c0_ref,
                     w_gates_ref, b_gates_ref, w_lin_ref, b_lin_ref,
                     out_ref, hn_ref, cn_ref):
    """One grid step == one LSTM timestep.

    hn_ref / cn_ref have a constant block index across the time grid, so they
    stay resident in VMEM and double as the recurrent (h, c) carry; they are
    only written back to HBM once, after the last step.
    """
    t = pl.program_id(0)

    @pl.when(t == 0)
    def _():
        hn_ref[...] = h0_ref[...]
        cn_ref[...] = c0_ref[...]

    x = x_ref[...]          # (B, IN)   streamed per step
    h = hn_ref[...]         # (B, H)    carry from previous step (resident)
    c = cn_ref[...]         # (B, H)

    # Single stacked gate matmul on [x ; h] with the bias already folded.
    xh = jnp.concatenate([x, h], axis=-1)                          # (B, IN+H)
    gates = (jnp.dot(xh, w_gates_ref[...],
                     preferred_element_type=jnp.float32)
             + b_gates_ref[...])                                   # (B, 4H)

    H = h.shape[-1]
    # Two full-vreg EUP passes (sigmoid + tanh) instead of four 32-lane ones.
    sig = jax.nn.sigmoid(gates)
    tnh = jnp.tanh(gates)
    i_g = sig[:, 0 * H:1 * H]
    f_g = sig[:, 1 * H:2 * H]
    g_g = tnh[:, 2 * H:3 * H]
    o_g = sig[:, 3 * H:4 * H]

    c_new = f_g * c + i_g * g_g
    h_new = o_g * jnp.tanh(c_new)

    # Linear + LogSoftmax(dim=-1)
    logits = (jnp.dot(h_new, w_lin_ref[...],
                      preferred_element_type=jnp.float32) + b_lin_ref[...])
    m = jnp.max(logits, axis=-1, keepdims=True)
    shifted = logits - m
    lse = jnp.log(jnp.sum(jnp.exp(shifted), axis=-1, keepdims=True))
    out_ref[...] = shifted - lse

    # Update the resident carry (also becomes the hn/cn outputs).
    hn_ref[...] = h_new
    cn_ref[...] = c_new


def lstm_sequence_pallas(params, x_seq, h0, c0):
    """Run the full T-step recurrence (LSTM cell + Linear + LogSoftmax per
    step) in a single pallas_call.  Equivalent to calling the PyTorch module's
    forward once per character while threading (hidden, c)."""
    T, B, IN = x_seq.shape
    H = h0.shape[-1]
    O = params["w_lin_t"].shape[-1]
    G = params["w_gates_t"].shape[0]          # IN + H

    def resident(shape):
        # Constant block index -> DMA'd into VMEM once, resident across all T.
        return pl.BlockSpec(shape, lambda t: (0,) * len(shape))

    return pl.pallas_call(
        _lstm_seq_kernel,
        grid=(T,),
        in_specs=[
            pl.BlockSpec((None, B, IN), lambda t: (t, 0, 0)),   # x_t per step
            resident((B, H)),                                   # h0
            resident((B, H)),                                   # c0
            resident((G, 4 * H)),                               # stacked gate W
            resident((1, 4 * H)),                               # folded gate bias
            resident((H, O)),                                   # linear W
            resident((1, O)),                                   # linear bias
        ],
        out_specs=(
            pl.BlockSpec((None, B, O), lambda t: (t, 0, 0)),    # per-step log-probs
            resident((B, H)),                                   # h carry / hn
            resident((B, H)),                                   # c carry / cn
        ),
        out_shape=(
            jax.ShapeDtypeStruct((T, B, O), jnp.float32),
            jax.ShapeDtypeStruct((B, H), jnp.float32),
            jax.ShapeDtypeStruct((B, H), jnp.float32),
        ),
        compiler_params=pltpu.CompilerParams(
            # The time axis is a true recurrence -> sequential ("arbitrary").
            # (A leading per-name "parallel" axis could be added for v7x
            #  multi-name throughput; not needed for this B=1 module.)
            dimension_semantics=("arbitrary",)),
    )(x_seq, h0, c0,
      params["w_gates_t"], params["b_gates"],
      params["w_lin_t"], params["b_lin"])


def lstm_module_forward(params, x, hidden, c):
    """Mirrors LSTM.forward(input, hidden, c) of the PyTorch module
    (a single timestep: input is unsqueezed to seq_len=1).

    x      : (B, input_size)
    hidden : (num_layers=1, B, hidden)
    c      : (num_layers=1, B, hidden)
    returns (log_probs (1, B, output), hn (1, B, hidden), cn (1, B, hidden))
    """
    log_probs, hn, cn = lstm_sequence_pallas(params, x[None], hidden[0], c[0])
    return log_probs, hn[None], cn[None]


def init_params(key, input_size, hidden_size, output_size):
    """Deterministic synthetic parameters (PyTorch-style U(-1/sqrt(H), 1/sqrt(H))).

    The gate weights are stacked and the two gate biases folded at init time so
    the kernel does a single matmul + single bias add per step."""
    ks = jax.random.split(key, 6)
    bound = 1.0 / jnp.sqrt(jnp.float32(hidden_size))
    u = lambda k, shape: jax.random.uniform(k, shape, jnp.float32, -bound, bound)
    w_ih_t = u(ks[0], (input_size, 4 * hidden_size))
    w_hh_t = u(ks[1], (hidden_size, 4 * hidden_size))
    b_ih = u(ks[2], (1, 4 * hidden_size))
    b_hh = u(ks[3], (1, 4 * hidden_size))
    return {
        "w_gates_t": jnp.concatenate([w_ih_t, w_hh_t], axis=0),  # (IN+H, 4H)
        "b_gates": b_ih + b_hh,                                   # (1, 4H)
        "w_lin_t": u(ks[4], (hidden_size, output_size)),          # (H, O)
        "b_lin":   u(ks[5], (1, output_size)),                    # (1, O)
    }


def _reference_sequence(params, x_seq, h0, c0):
    """Pure-JAX reference (scan over T steps) with identical semantics."""
    H = h0.shape[-1]

    def step(carry, x):
        h, c = carry
        gates = (jnp.concatenate([x, h], axis=-1) @ params["w_gates_t"]
                 + params["b_gates"])
        i_g = jax.nn.sigmoid(gates[:, 0 * H:1 * H])
        f_g = jax.nn.sigmoid(gates[:, 1 * H:2 * H])
        g_g = jnp.tanh(gates[:, 2 * H:3 * H])
        o_g = jax.nn.sigmoid(gates[:, 3 * H:4 * H])
        c_new = f_g * c + i_g * g_g
        h_new = o_g * jnp.tanh(c_new)
        logits = h_new @ params["w_lin_t"] + params["b_lin"]
        return (h_new, c_new), jax.nn.log_softmax(logits, axis=-1)

    (hn, cn), log_probs = jax.lax.scan(step, (h0, c0), x_seq)
    return log_probs, hn, cn


if __name__ == "__main__":
    # Shapes consistent with the name-classifier usage:
    #   n_letters = len(string.ascii_letters + " .,;'") = 57, one name at a time,
    #   18 language categories, hidden size 32, an 8-character name.
    input_size = 57
    hidden_size = 32
    output_size = 18
    batch = 1
    num_layers = 1
    seq_len = 8

    key = jax.random.PRNGKey(0)
    k_par, k_x = jax.random.split(key)
    params = init_params(k_par, input_size, hidden_size, output_size)

    x_seq = jax.random.normal(k_x, (seq_len, batch, input_size), jnp.float32)
    # initHiddenAndC(): zeros of shape (num_layers, 1, hidden_size)
    hidden = jnp.zeros((num_layers, batch, hidden_size), jnp.float32)
    c = jnp.zeros((num_layers, batch, hidden_size), jnp.float32)

    # Fused whole-sequence kernel (== the module's forward applied T times).
    log_probs, hn, cn = lstm_sequence_pallas(params, x_seq, hidden[0], c[0])
    jax.block_until_ready((log_probs, hn, cn))

    ref_lp, ref_hn, ref_cn = _reference_sequence(params, x_seq, hidden[0], c[0])
    assert log_probs.shape == (seq_len, batch, output_size)
    assert hn.shape == (batch, hidden_size)
    assert cn.shape == (batch, hidden_size)
    assert jnp.allclose(log_probs, ref_lp, atol=1e-5)
    assert jnp.allclose(hn, ref_hn, atol=1e-5)
    assert jnp.allclose(cn, ref_cn, atol=1e-5)

    # Single-step call with the exact PyTorch forward signature/semantics.
    lp1, hn1, cn1 = lstm_module_forward(params, x_seq[0], hidden, c)
    jax.block_until_ready((lp1, hn1, cn1))
    assert lp1.shape == (1, batch, output_size)
    assert hn1.shape == (num_layers, batch, hidden_size)
    assert cn1.shape == (num_layers, batch, hidden_size)
    assert jnp.allclose(lp1[0], ref_lp[0], atol=1e-5)

    print("KERNEL_OK")
</pallas_src>

<mosaic_0001>
module attributes {stable_mosaic.version = 11 : i64} {
  func.func @_lstm_seq_kernel(%arg0: i32, %arg1: memref<1x1x57xf32, #tpu.memory_space<vmem>>, %arg2: memref<1x32xf32, #tpu.memory_space<vmem>>, %arg3: memref<1x32xf32, #tpu.memory_space<vmem>>, %arg4: memref<89x128xf32, #tpu.memory_space<vmem>>, %arg5: memref<1x128xf32, #tpu.memory_space<vmem>>, %arg6: memref<32x18xf32, #tpu.memory_space<vmem>>, %arg7: memref<1x18xf32, #tpu.memory_space<vmem>>, %arg8: memref<1x1x18xf32, #tpu.memory_space<vmem>>, %arg9: memref<1x32xf32, #tpu.memory_space<vmem>>, %arg10: memref<1x32xf32, #tpu.memory_space<vmem>>) attributes {dimension_semantics = [#tpu.dimension_semantics<arbitrary>], iteration_bounds = array<i64: 8>, scalar_prefetch = 0 : i64, scratch_operands = 0 : i64, tpu.core_type = #tpu.core_type<tc>, window_params = [{transform_indices = @transform_0, window_bounds = array<i64: 1, 1, 57>}, {pipeline_mode = #tpu.pipeline_mode<synchronous>, transform_indices = @transform_1, window_bounds = array<i64: 1, 32>}, {pipeline_mode = #tpu.pipeline_mode<synchronous>, transform_indices = @transform_2, window_bounds = array<i64: 1, 32>}, {pipeline_mode = #tpu.pipeline_mode<synchronous>, transform_indices = @transform_3, window_bounds = array<i64: 89, 128>}, {pipeline_mode = #tpu.pipeline_mode<synchronous>, transform_indices = @transform_4, window_bounds = array<i64: 1, 128>}, {pipeline_mode = #tpu.pipeline_mode<synchronous>, transform_indices = @transform_5, window_bounds = array<i64: 32, 18>}, {pipeline_mode = #tpu.pipeline_mode<synchronous>, transform_indices = @transform_6, window_bounds = array<i64: 1, 18>}, {transform_indices = @transform_7, window_bounds = array<i64: 1, 1, 18>}, {pipeline_mode = #tpu.pipeline_mode<synchronous>, transform_indices = @transform_8, window_bounds = array<i64: 1, 32>}, {pipeline_mode = #tpu.pipeline_mode<synchronous>, transform_indices = @transform_9, window_bounds = array<i64: 1, 32>}]} {
    %c0_i32 = arith.constant 0 : i32
    %0 = arith.cmpi eq, %arg0, %c0_i32 : i32
    %1 = arith.extui %0 : i1 to i32
    %c0_i32_0 = arith.constant 0 : i32
    %2 = arith.cmpi ne, %1, %c0_i32_0 : i32
    scf.if %2 {
      %c0_26 = arith.constant 0 : index
      %c0_27 = arith.constant 0 : index
      %46 = vector.load %arg2[%c0_26, %c0_27] : memref<1x32xf32, #tpu.memory_space<vmem>>, vector<1x32xf32>
      %c0_28 = arith.constant 0 : index
      %c0_29 = arith.constant 0 : index
      %47 = vector.load %arg9[%c0_28, %c0_29] : memref<1x32xf32, #tpu.memory_space<vmem>>, vector<1x32xf32>
      tpu.vector_store %arg9[%c0_28, %c0_29], %46 {strides = array<i32>} : memref<1x32xf32, #tpu.memory_space<vmem>>, vector<1x32xf32>,
      %c0_30 = arith.constant 0 : index
      %c0_31 = arith.constant 0 : index
      %48 = vector.load %arg3[%c0_30, %c0_31] : memref<1x32xf32, #tpu.memory_space<vmem>>, vector<1x32xf32>
      %c0_32 = arith.constant 0 : index
      %c0_33 = arith.constant 0 : index
      %49 = vector.load %arg10[%c0_32, %c0_33] : memref<1x32xf32, #tpu.memory_space<vmem>>, vector<1x32xf32>
      tpu.vector_store %arg10[%c0_32, %c0_33], %48 {strides = array<i32>} : memref<1x32xf32, #tpu.memory_space<vmem>>, vector<1x32xf32>,
    } else {
    }
    %c0 = arith.constant 0 : index
    %c0_1 = arith.constant 0 : index
    %c0_2 = arith.constant 0 : index
    %3 = vector.load %arg1[%c0, %c0_1, %c0_2] : memref<1x1x57xf32, #tpu.memory_space<vmem>>, vector<1x1x57xf32>
    %4 = vector.shape_cast %3 : vector<1x1x57xf32> to vector<1x57xf32>
    %c0_3 = arith.constant 0 : index
    %c0_4 = arith.constant 0 : index
    %5 = vector.load %arg9[%c0_3, %c0_4] : memref<1x32xf32, #tpu.memory_space<vmem>>, vector<1x32xf32>
    %c0_5 = arith.constant 0 : index
    %c0_6 = arith.constant 0 : index
    %6 = vector.load %arg10[%c0_5, %c0_6] : memref<1x32xf32, #tpu.memory_space<vmem>>, vector<1x32xf32>
    %7 = tpu.concatenate %4, %5 in 1 : vector<1x57xf32>, vector<1x32xf32> -> vector<1x89xf32>
    %c0_7 = arith.constant 0 : index
    %c0_8 = arith.constant 0 : index
    %8 = vector.load %arg4[%c0_7, %c0_8] : memref<89x128xf32, #tpu.memory_space<vmem>>, vector<89x128xf32>
    %cst = arith.constant dense<0.000000e+00> : vector<1x128xf32>
    %9 = tpu.matmul %7, %8, %cst {dimension_numbers = #tpu.dot_dimension_numbers<[1], [0], [0], [1], [0, 0, 1, 1], [], []>} : vector<1x89xf32>, vector<89x128xf32>, vector<1x128xf32> -> vector<1x128xf32>
    %c0_9 = arith.constant 0 : index
    %c0_10 = arith.constant 0 : index
    %10 = vector.load %arg5[%c0_9, %c0_10] : memref<1x128xf32, #tpu.memory_space<vmem>>, vector<1x128xf32>
    %11 = arith.addf %9, %10 : vector<1x128xf32>
    %12 = arith.negf %11 : vector<1x128xf32>
    %13 = math.exp %12 : vector<1x128xf32>
    %cst_11 = arith.constant 1.000000e+00 : f32
    %14 = vector.broadcast %cst_11 : f32 to vector<1x128xf32>
    %15 = arith.addf %14, %13 : vector<1x128xf32>
    %16 = arith.divf %14, %15 : vector<1x128xf32>
    %17 = math.tanh %11 : vector<1x128xf32>
    %18 = vector.extract_strided_slice %16 {offsets = [0, 0], sizes = [1, 32], strides = [1, 1]} : vector<1x128xf32> to vector<1x32xf32>
    %19 = vector.extract_strided_slice %16 {offsets = [0, 32], sizes = [1, 32], strides = [1, 1]} : vector<1x128xf32> to vector<1x32xf32>
    %20 = vector.extract_strided_slice %17 {offsets = [0, 64], sizes = [1, 32], strides = [1, 1]} : vector<1x128xf32> to vector<1x32xf32>
    %21 = vector.extract_strided_slice %16 {offsets = [0, 96], sizes = [1, 32], strides = [1, 1]} : vector<1x128xf32> to vector<1x32xf32>
    %22 = arith.mulf %19, %6 : vector<1x32xf32>
    %23 = arith.mulf %18, %20 : vector<1x32xf32>
    %24 = arith.addf %22, %23 : vector<1x32xf32>
    %25 = math.tanh %24 : vector<1x32xf32>
    %26 = arith.mulf %21, %25 : vector<1x32xf32>
    %c0_12 = arith.constant 0 : index
    %c0_13 = arith.constant 0 : index
    %27 = vector.load %arg6[%c0_12, %c0_13] : memref<32x18xf32, #tpu.memory_space<vmem>>, vector<32x18xf32>
    %cst_14 = arith.constant dense<0.000000e+00> : vector<1x18xf32>
    %28 = tpu.matmul %26, %27, %cst_14 {dimension_numbers = #tpu.dot_dimension_numbers<[1], [0], [0], [1], [0, 0, 1, 1], [], []>} : vector<1x32xf32>, vector<32x18xf32>, vector<1x18xf32> -> vector<1x18xf32>
    %c0_15 = arith.constant 0 : index
    %c0_16 = arith.constant 0 : index
    %29 = vector.load %arg7[%c0_15, %c0_16] : memref<1x18xf32, #tpu.memory_space<vmem>>, vector<1x18xf32>
    %30 = arith.addf %28, %29 : vector<1x18xf32>
    %cst_17 = arith.constant dense<0xFF800000> : vector<1xf32>
    %31 = vector.multi_reduction <maximumf>, %30, %cst_17 [1] : vector<1x18xf32> to vector<1xf32>
    %32 = vector.shape_cast %31 : vector<1xf32> to vector<1x1xf32>
    %33 = vector.broadcast %32 : vector<1x1xf32> to vector<1x18xf32>
    %34 = arith.subf %30, %33 : vector<1x18xf32>
    %35 = math.exp %34 : vector<1x18xf32>
    %cst_18 = arith.constant dense<0.000000e+00> : vector<1xf32>
    %36 = vector.multi_reduction <add>, %35, %cst_18 [1] : vector<1x18xf32> to vector<1xf32>
    %37 = vector.shape_cast %36 : vector<1xf32> to vector<1x1xf32>
    %38 = math.log %37 : vector<1x1xf32>
    %39 = vector.broadcast %38 : vector<1x1xf32> to vector<1x18xf32>
    %40 = arith.subf %34, %39 : vector<1x18xf32>
    %c0_19 = arith.constant 0 : index
    %c0_20 = arith.constant 0 : index
    %c0_21 = arith.constant 0 : index
    %41 = vector.load %arg8[%c0_19, %c0_20, %c0_21] : memref<1x1x18xf32, #tpu.memory_space<vmem>>, vector<1x1x18xf32>
    %42 = vector.shape_cast %41 : vector<1x1x18xf32> to vector<1x18xf32>
    %43 = vector.shape_cast %40 : vector<1x18xf32> to vector<1x1x18xf32>
    tpu.vector_store %arg8[%c0_19, %c0_20, %c0_21], %43 {strides = array<i32>} : memref<1x1x18xf32, #tpu.memory_space<vmem>>, vector<1x1x18xf32>,
    %c0_22 = arith.constant 0 : index
    %c0_23 = arith.constant 0 : index
    %44 = vector.load %arg9[%c0_22, %c0_23] : memref<1x32xf32, #tpu.memory_space<vmem>>, vector<1x32xf32>
    tpu.vector_store %arg9[%c0_22, %c0_23], %26 {strides = array<i32>} : memref<1x32xf32, #tpu.memory_space<vmem>>, vector<1x32xf32>,
    %c0_24 = arith.constant 0 : index
    %c0_25 = arith.constant 0 : index
    %45 = vector.load %arg10[%c0_24, %c0_25] : memref<1x32xf32, #tpu.memory_space<vmem>>, vector<1x32xf32>
    tpu.vector_store %arg10[%c0_24, %c0_25], %24 {strides = array<i32>} : memref<1x32xf32, #tpu.memory_space<vmem>>, vector<1x32xf32>,
    return
  }
  func.func @transform_0(%arg0: i32) -> (i32, i32, i32) {
    %c0_i32 = arith.constant 0 : i32
    %c0_i32_0 = arith.constant 0 : i32
    %c0_i32_1 = arith.constant 0 : i32
    return %arg0, %c0_i32, %c0_i32_0 : i32, i32, i32
  }
  func.func @transform_1(%arg0: i32) -> (i32, i32) {
    %c0_i32 = arith.constant 0 : i32
    %c0_i32_0 = arith.constant 0 : i32
    %c0_i32_1 = arith.constant 0 : i32
    return %c0_i32, %c0_i32_0 : i32, i32
  }
  func.func @transform_2(%arg0: i32) -> (i32, i32) {
    %c0_i32 = arith.constant 0 : i32
    %c0_i32_0 = arith.constant 0 : i32
    %c0_i32_1 = arith.constant 0 : i32
    return %c0_i32, %c0_i32_0 : i32, i32
  }
  func.func @transform_3(%arg0: i32) -> (i32, i32) {
    %c0_i32 = arith.constant 0 : i32
    %c0_i32_0 = arith.constant 0 : i32
    %c0_i32_1 = arith.constant 0 : i32
    return %c0_i32, %c0_i32_0 : i32, i32
  }
  func.func @transform_4(%arg0: i32) -> (i32, i32) {
    %c0_i32 = arith.constant 0 : i32
    %c0_i32_0 = arith.constant 0 : i32
    %c0_i32_1 = arith.constant 0 : i32
    return %c0_i32, %c0_i32_0 : i32, i32
  }
  func.func @transform_5(%arg0: i32) -> (i32, i32) {
    %c0_i32 = arith.constant 0 : i32
    %c0_i32_0 = arith.constant 0 : i32
    %c0_i32_1 = arith.constant 0 : i32
    return %c0_i32, %c0_i32_0 : i32, i32
  }
  func.func @transform_6(%arg0: i32) -> (i32, i32) {
    %c0_i32 = arith.constant 0 : i32
    %c0_i32_0 = arith.constant 0 : i32
    %c0_i32_1 = arith.constant 0 : i32
    return %c0_i32, %c0_i32_0 : i32, i32
  }
  func.func @transform_7(%arg0: i32) -> (i32, i32, i32) {
    %c0_i32 = arith.constant 0 : i32
    %c0_i32_0 = arith.constant 0 : i32
    %c0_i32_1 = arith.constant 0 : i32
    return %arg0, %c0_i32, %c0_i32_0 : i32, i32, i32
  }
  func.func @transform_8(%arg0: i32) -> (i32, i32) {
    %c0_i32 = arith.constant 0 : i32
    %c0_i32_0 = arith.constant 0 : i32
    %c0_i32_1 = arith.constant 0 : i32
    return %c0_i32, %c0_i32_0 : i32, i32
  }
  func.func @transform_9(%arg0: i32) -> (i32, i32) {
    %c0_i32 = arith.constant 0 : i32
    %c0_i32_0 = arith.constant 0 : i32
    %c0_i32_1 = arith.constant 0 : i32
    return %c0_i32, %c0_i32_0 : i32, i32
  }
}

</mosaic_0001>

<bundles_post_ra>
// kernel: tpu_custom_call.1
= control target key start
LH: loop header
LB: loop body
LE: loop exit
PB: predicated region body
PF: predicated region fallthrough
CT: control target
= control target key end

     0   :  { %15 = vsyncpa [#allocation3], 0  ;;  %s1342_s0 = inlined_call_operand.vmem [shape: f32[8,1,57], index: 0, kind: input, shape index: {}]   ;;  %s1343_s1 = inlined_call_operand.vmem [shape: f32[1,32], index: 1, kind: input, shape index: {}]   ;;  %s1344_s2 = inlined_call_operand.vmem [shape: f32[1,32], index: 2, kind: input, shape index: {}]   ;;  %s1345_s3 = inlined_call_operand.hbm [shape: f32[89,128], index: 3, kind: input, shape index: {}]   ;;  %s1346_s4 = inlined_call_operand.vmem [shape: f32[1,128], index: 4, kind: input, shape index: {}]   ;;  %s1347_s5 = inlined_call_operand.vmem [shape: f32[32,18], index: 5, kind: input, shape index: {}]   ;;  %s1348_s6 = inlined_call_operand.vmem [shape: f32[1,18], index: 6, kind: input, shape index: {}]   ;;  %s1349_s7 = inlined_call_operand.hbm [shape: f32[8,1,18], index: 7, kind: output, shape index: {0}]   ;;  %s1350_s8 = inlined_call_operand.hbm [shape: f32[1,32], index: 8, kind: output, shape index: {1}]   ;;  %s1351_s9 = inlined_call_operand.hbm [shape: f32[1,32], index: 9, kind: output, shape index: {2}]  }
   0x1   :  { %16 = vsyncpa [#allocation4], 0 }
   0x2   :  { %18 = vsyncpa [#allocation4 + $0x1], 0 }
   0x3   :  { %19 = vsyncpa [#allocation7], 0  ;;  %s1106_s30 = smov 0   ;;  %s1108_s10 = smov 0  }
   0x4   :  { %s1110_s11 = smov 0   ;;  %s1112_s12 = smov 0  }
   0x5 LB: > { %s1127_s13 = sadd.s32 4294967295, %s1040_s12   ;;  %s703_s14 = sadd.s32 4294967294, %s1040_s12   ;;  %s1040_s12 = sphi %s1112_s12, %s1377_s12   ;;  %s1036_s11 = sphi %s1110_s11, %s1376_s11   ;;  %s1032_s10 = sphi %s1108_s10, %s1375_s10   ;;  %s1028_s30 = sphi %s1106_s30, %s1374_s30  }
   0x6   : > { %s1131_s15 = sadd.s32 1, %s1040_s12   ;;  %s184_s16 = sadd.s32 1, %s1036_s11 }
   0x7   : > { %s181_s17 = ssub.s32 %s1040_s12, %s1131_s15  ;;  %p194_p0 = scmp.ne.s32.totalorder %s1036_s11, %s1032_s10 }
   0x8   : > { %p182_p1 = scmp.eq.s32.totalorder %s181_s17, 0  ;;  %p1352_p2 = scmp.eq.s32.totalorder %s1127_s13, 7 }
   0x9   : > { %p200_p3 = scmp.ne.s32.totalorder %s1032_s10, %s1028_s30  ;;  %p201_p4 = scmp.eq.s32.totalorder %s703_s14, 7 }
   0xa   : > { %s1142_s18 = scalar_select %p182_p1, %s1036_s11, %s184_s16  }
   0xb   : > { %p1146_p5 = por %p1352_p2, %p194_p0  ;;  %p1150_p6 = por %p201_p4, %p200_p3 }
   0xc   : > { %p704_p7 = scmp.ge.s32.totalorder %s1040_s12, 1  ;;  %p250_p8 = scmp.lt.s32.totalorder %s1040_s12, 9 }
   0xd   : > { %s1356_s19 = scalar_select %p1146_p5, 1, 0 }
   0xe   : > { %s1357_s20 = scalar_select %p1150_p6, 1, 0 }
   0xf   : > { %p1353_p10 = scmp.eq.s32.totalorder %s1127_s13, 0  ;;  %p1158_p11 = pnand %p704_p7, %p250_p8 }
  0x10   : > { %s1042_s22 = smov [#allocation2]   ;;  %s890_s27 = scalar_lea.hbm %s1345_s3, 1536 }
  0x11   : > { %s1358_s21 = scalar_select %p1158_p11, 1, 0 }
  0x12   : > { %s268_s23 = sshll.u32 %s1042_s22, 4  ;;  %p818_p12 = pneg %p1158_p11  ;;  %s269_s23 = int_to_ptr.vmem [resolvable:$true] %s268_s23 }
  0x13   : > { %p891_p0 = scmp.ne.s32.totalorder %s1345_s3, %s890_s27  ;;  %p897_p7 = scmp.lt.u32.totalorder %s890_s27, %s1345_s3 }
  0x14   : > { %p1166_p13 = pnand %p1353_p10, %p818_p12 }
  0x16   : > { %p892_p1 = pneg %p1166_p13 }
  0x18   : > { %p893_p3 = pnand %p892_p1, %p891_p0 }
  0x1a   : > { %p894_p4 = pneg %p893_p3 }
  0x1c   : > { %p899_p8 = pnand %p897_p7, %p894_p4 }
  0x1e   : > { %902 = shalt.err (!%p899_p8)
}
  0x1f   : > { %s903_s17 = scalar_lea.vmem %s269_s23, 1536  ;;  %p911_p10 = scmp.lt.s32.totalorder %s269_s23, %s269_s23 }
  0x20   : > { %p904_p12 = scmp.ne.s32.totalorder %s269_s23, %s903_s17  ;;  %p912_p6 = scmp.lt.s32.totalorder %s903_s17, %s903_s17 }
  0x22   : > { %p906_p2 = pnand %p904_p12, %p892_p1  ;;  %p913_p5 = por %p912_p6, %p911_p10 }
  0x24   : > { %p907_p9 = pneg %p906_p2 }
  0x26   : > { %p914_p11 = pnand %p913_p5, %p907_p9 }
  0x28   : > { %917 = shalt.err (!%p914_p11)
}
  0x29   : > { %s1043_s22 = smov 128   ;;  %s1044_s25 = smov 8  }
  0x2a   : > { %821 = dma.hbm_to_vmem [thread:$0]  (!%p1166_p13), %s1345_s3, 1536, %s269_s23, [#allocation3], %s1043_s22, %s1043_s22, %s1044_s25  }
  0x2b   : > { %p1360_p0 = scmp.ne.s32.totalorder %s1358_s21, 0 }
  0x2c   : > { %p1361_p3 = scmp.eq.s32.totalorder (!%p1360_p0), %s1127_s13, 0 }
  0x2d   : > { %299 = sbr.rel (%p1360_p0) target bundleno = 1432 (0x598), region = 48 }
  0x34   : > { %1015 = dma.done.wait (%p1361_p3), [#allocation3], 1536   ;;  %p1362_p2 = pmov %p1361_p3 }
  0x35   : > { %s326_s27 = sand.u32 1, %s1032_s10   ;;  %p332_p5 = scmp.lt.s32.totalorder %s1127_s13, 7 }
  0x36   : > { %1017 = vsyncadd (%p1362_p2), [#allocation3], 4294965760  ;;  %s1203_s14 = scalar_lea.vmem [#allocation5], %s326_s27  ;;  %p1363_p6 = scmp.ne.s32.totalorder %s1127_s13, 0 }
  0x37   : > { %s1195_s24 = scalar_select %p332_p5, %s1127_s13, 7 }
  0x38   : > { %338 = sbr.rel (%p1363_p6) target bundleno = 63 (0x3f), region = 56  ;;  %v339_v0 = vld [vmem:[%s1343_s1] sm:$0x1] (!%p1363_p6)  ;;  %vm340_vm0 = vcmask (!%p1363_p6), 253952  }
  0x39   : > { %s334_s21 = scalar_lea.vmem %s1342_s0, %s1195_s24  ;;  %v342_v1 = vld [vmem:[%s1344_s2] sm:$0x1] (!%p1363_p6)  ;;  %341 = vst.msk [vmem:[#allocation6] sm:$0x1] (!%p1363_p6), %vm340_vm0, %v339_v0 }
  0x3a   : > { %343 = vst.msk [vmem:[#allocation8] sm:$0x1] (!%p1363_p6), %vm340_vm0, %v342_v1 }
  0x3f PF: > { %v357_v3 = vld [vmem:[#allocation2] sm:$0xff]  ;;  %v358_v4 = vld [vmem:[#allocation2 + $0x8] sm:$0xff]  ;;  %s1045_s26 = smov 57   ;;  %v1046_v5 = vmov 0.0|0.0   ;;  %v359_v7 = vld [vmem:[#allocation2 + $0x10] sm:$0xff]  ;;  %vm1047_vm1 = vmmov 0  }
  0x40   : > { %v710_v2 = vld [vmem:[#allocation6] ss:$0 sm:$0xff]  ;;  %779 = vmatprep.subr.bf16.mxu0 %v1046_v5  ;;  %v780_v6 = vpack.c.bf16 %v358_v4, %v357_v3  ;;  %v360_v8 = vld [vmem:[#allocation2 + $0x18] sm:$0xff]  ;;  %798 = vmatprep.subr.bf16.mxu1 %v1046_v5  ;;  %v1048_v10 = vmov 0.0   ;;  %v362_v12 = vld [vmem:[#allocation2 + $0x28] sm:$0xff]  ;;  %s1049_s28 = smov 32  }
  0x41   : > { %352 = vrot.lane.b32.xlu0 %v710_v2, %s1045_s26  ;;  %v783_v9 = vpack.c.bf16 %v360_v8, %v359_v7  ;;  %765 = vmatprep.mubr.msk.f32.mxu0 %vm1047_vm1, %v1048_v10  ;;  %v361_v11 = vld [vmem:[#allocation2 + $0x20] sm:$0xff]  ;;  %v363_v15 = vld [vmem:[#allocation2 + $0x30] sm:$0xff]  ;;  %v364_v16 = vld [vmem:[#allocation2 + $0x38] sm:$0xff]  ;;  %vm374_vm2 = vcmask 1040384   ;;  %vm1050_vm3 = vmmov 1   ;;  %vm355_vm5 = vcmask 465920  }
  0x42   : > { %781 = vmatpush3.bf16.msra.mxu0 %v780_v6  ;;  %776 = vmatprep.mubr.msk.f32.mxu1 %vm1047_vm1, %v1048_v10  ;;  %v714_v13 = vld [vmem:[#allocation8] ss:$0 sm:$0xff]  ;;  %v786_v14 = vpack.c.bf16 %v362_v12, %v361_v11  ;;  %v789_v17 = vpack.c.bf16 %v364_v16, %v363_v15  ;;  %v366_v19 = vld [vmem:[#allocation2 + $0x48] sm:$0xff]  ;;  %v367_v21 = vld [vmem:[#allocation2 + $0x50] sm:$0xff]  ;;  %vm370_vm6 = vcmask 728064   ;;  %s1051_s22 = smov 64  }
  0x43   : > { %782 = vmatprep.subr.bf16.mxu0 %v1046_v5  ;;  %460 = vrot.lane.b32.xlu1 %v714_v13, %s1049_s28  ;;  %v365_v18 = vld [vmem:[#allocation2 + $0x40] sm:$0xff]  ;;  %v368_v22 = vld [vmem:[#allocation2 + $0x58] sm:$0x1]  ;;  %vm796_vm4 = vmpackc.low %vm374_vm2, %vm1050_vm3  ;;  %vm488_vm7 = vcmask 261120   ;;  %vm576_vm8 = vcmask 253952   ;;  %vm561_vm9 = vcmask 139264  }
  0x44   : > { %v792_v20 = vpack.c.bf16 %v366_v19, %v365_v18  ;;  %v795_v23 = vpack.c.bf16 %v368_v22, %v367_v21  ;;  %v344_v24 = vld [vmem:[%s334_s21] sm:$0x1]  ;;  %v481_v43 = vld [vmem:[%s1347_s5 + $0x8] sm:$0xff]  ;;  %v482_v44 = vld [vmem:[%s1347_s5 + $0x10] sm:$0xff]  ;;  %p1364_p10 = scmp.eq.s32.totalorder %s1127_s13, 7 }
  0x45   : > { %v369_v27 = vld [vmem:[%s1346_s4] sm:$0x1]  ;;  %v483_v46 = vld [vmem:[%s1347_s5 + $0x18] sm:$0xff] }
  0x46   : > { %784 = vmatpush3.bf16.msra.mxu0 %v783_v9  ;;  %v480_v42 = vld [vmem:[%s1347_s5] sm:$0xff]  ;;  %v802_v47 = vpack.c.bf16 %v483_v46, %v482_v44 }
  0x47   : > { %785 = vmatprep.subr.bf16.mxu0 %v1046_v5  ;;  %v799_v45 = vpack.c.bf16 %v481_v43, %v480_v42  ;;  %v484_v52 = vld [vmem:[%s1348_s6] sm:$0x1] }
  0x49   : > { %800 = vmatpush3.bf16.msra.mxu1 %v799_v45 }
  0x4a   : > { %787 = vmatpush3.bf16.msra.mxu0 %v786_v14  ;;  %801 = vmatprep.subr.bf16.mxu1 %v1046_v5 }
  0x4b   : > { %788 = vmatprep.subr.bf16.mxu0 %v1046_v5 }
  0x4d   : > { %803 = vmatpush3.bf16.msra.mxu1 %v802_v47 }
  0x4e   : > { %790 = vmatpush3.bf16.msra.mxu0 %v789_v17 }
  0x4f   : > { %791 = vmatprep.subr.bf16.mxu0 %v1046_v5 }
  0x52   : > { %793 = vmatpush3.bf16.msra.mxu0 %v792_v20 }
  0x53   : > { %794 = vmatprep.subr.bf16.mxu0 %v1046_v5 }
  0x56   : > { %797 = vmatpush3.bf16.msk.msra.mxu0 %vm796_vm4, %v795_v23 }
  0xb3   : > { %v353_v25 = vpop.permute.xlu0 %352 }
  0xb4   : > { %v356_v26 = vsel %vm355_vm5, %v344_v24, %v353_v25 }
  0xb5   : > { %766 = vmatmul.mubr.msk.f32.vlgmr.msra.gmra.mrb[0].mxu0 %vm370_vm6, %v356_v26  ;;  %v461_v38 = vpop.permute.xlu1 %460 }
 0x188   : > { %v444_v28 = vpop.f32.mrb[0].mxu0 }
 0x189   : > { %v445_v29 = vadd.f32 %v444_v28, %v369_v27  ;;  %v767_v30 = vpop.f32.mrb[1].mxu0 }
 0x18b   : > { %878 = vtanh.f32 %v445_v29  ;;  %v713_v32 = vmul.f32 -1.442695, %v445_v29 }
 0x18d   : > { %880 = vpow2.f32 %v713_v32 }
 0x195   : > { %v879_v31 = vpop.eup %878 }
 0x196   : > { %465 = vrot.lane.b32.xlu0 %v879_v31, %s1051_s22 }
 0x197   : > { %v881_v33 = vpop.eup %880 }
 0x198   : > { %v451_v34 = vadd.f32 1.0, %v881_v33 }
 0x19a   : > { %882 = vrcp.f32 %v451_v34 }
 0x1a4   : > { %v883_v35 = vpop.eup %882 }
 0x1a5   : > { %v463_v39 = vmul.f32 %v883_v35, %v461_v38 }
 0x208   : > { %v466_v36 = vpop.permute.xlu0 %465 }
 0x209   : > { %v468_v37 = vmul.f32 %v883_v35, %v466_v36 }
 0x20b   : > { %470 = vrot.lane.b32.xlu1 %v468_v37, %s1049_s28 }
 0x27d   : > { %v471_v40 = vpop.permute.xlu1 %470 }
 0x27e   : > { %v473_v41 = vadd.f32 %v471_v40, %v463_v39 }
 0x280   : > { %884 = vtanh.f32 %v473_v41 }
 0x28a   : > { %v885_v48 = vpop.eup %884 }
 0x28b   : > { %476 = vrot.lane.b32.xlu0 %v885_v48, %s1051_s22  ;;  %s1052_s22 = smov 96  }
 0x2fd   : > { %v477_v49 = vpop.permute.xlu0 %476 }
 0x2fe   : > { %v479_v50 = vmul.f32 %v883_v35, %v477_v49 }
 0x300   : > { %486 = vrot.lane.b32.xlu1 %v479_v50, %s1049_s28  ;;  %s1053_s28 = smov [#allocation6]  }
 0x301   : > { %s607_s25 = sshll.u32 %s1053_s28, 4  ;;  %s608_s25 = int_to_ptr.vmem [resolvable:$true] %s607_s25 }
 0x302   : > { %s918_s26 = scalar_lea.vmem %s608_s25, 16  ;;  %s924_s29 = scalar_lea.vmem %s608_s25, 32 }
 0x303   : > { %p919_p9 = scmp.ne.s32.totalorder %s608_s25, %s918_s26  ;;  %p925_p1 = scmp.lt.s32.totalorder %s608_s25, %s608_s25 }
 0x304   : > { %p926_p4 = scmp.lt.s32.totalorder %s924_s29, %s918_s26 }
 0x305   : > { %p920_p11 = pnand %p919_p9, %p1364_p10 }
 0x306   : > { %p927_p7 = por %p926_p4, %p925_p1 }
 0x307   : > { %p921_p13 = pneg %p920_p11 }
 0x309   : > { %p928_p8 = pnand %p927_p7, %p921_p13 }
 0x372   : > { %v487_v51 = vpop.permute.xlu1 %486 }
 0x373   : > { %777 = vmatmul.mubr.msk.f32.vlgmr.msra.gmra.mrb[0].mxu1 %vm488_vm7, %v487_v51  ;;  %577 = vst.msk [vmem:[#allocation6] sm:$0x1] %vm576_vm8, %v487_v51 }
 0x446   : > { %v557_v53 = vpop.f32.mrb[0].mxu1 }
 0x447   : > { %v558_v54 = vadd.f32 %v557_v53, %v484_v52  ;;  %v778_v55 = vpop.f32.mrb[1].mxu1 }
 0x449   : > { %v562_v56 = vsel %vm561_vm9, %v558_v54, -inf }
 0x44a   : > { %563 = vmax.xlane.f32.xlu0 %v562_v56 }
 0x460   : > { %579 = vrot.lane.b32.xlu0 %v473_v41, %s1052_s22 }
 0x4d7   : > { %v564_v57 = vpop.xlane.xlu0 %563 }
 0x4d8   : > { %v565_v58 = vsub.f32 %v558_v54, %v564_v57 }
 0x4da   : > { %v566_v59 = vmul.f32 1.442695, %v565_v58 }
 0x4db   : > { %v580_v60 = vpop.permute.xlu0 %579 }
 0x4dc   : > { %886 = vpow2.f32 %v566_v59  ;;  %582 = vst.msk [vmem:[#allocation8] sm:$0x1] %vm576_vm8, %v580_v60 }
 0x4e6   : > { %v887_v61 = vpop.eup %886 }
 0x4e7   : > { %v568_v62 = vsel %vm561_vm9, %v887_v61, 0.0 }
 0x4e8   : > { %569 = vadd.xlane.f32.xlu1 %v568_v62 }
 0x4e9   : > { %931 = shalt.err (!%p928_p8)
}
 0x4ea   : > { %s932_s17 = scalar_lea.hbm %s1350_s8, 16  ;;  %p1365_p0 = pmov %p1364_p10 }
 0x4eb   : > { %p933_p12 = scmp.ne.s32.totalorder %s1350_s8, %s932_s17  ;;  %p938_p5 = scmp.lt.u32.totalorder %s932_s17, %s1350_s8 }
 0x4ed   : > { %p934_p3 = pnand %p933_p12, %p1365_p0 }
 0x4ef   : > { %p935_p2 = pneg %p934_p3 }
 0x4f1   : > { %p940_p6 = pnand %p938_p5, %p935_p2 }
 0x4f3   : > { %943 = shalt.err (!%p940_p6)
}
 0x4f4   : > { %p1366_p9 = pmov %p1365_p0  ;;  %s1054_s23 = smov [#allocation8]  }
 0x4f5   : > { %s618_s16 = sshll.u32 %s1054_s23, 4  ;;  %p1367_p11 = pmov %p1365_p0  ;;  %s619_s16 = int_to_ptr.vmem [resolvable:$true] %s618_s16 }
 0x4f6   : > { %810 = dma.vmem_to_hbm [thread:$0]  (%p1366_p9), %s608_s25, 16, %s1350_s8, [#allocation7]  }
 0x4f7   : > { %s944_s24 = scalar_lea.vmem %s619_s16, 16  ;;  %s950_s21 = scalar_lea.vmem %s619_s16, 32 }
 0x4f8   : > { %p945_p10 = scmp.ne.s32.totalorder %s619_s16, %s944_s24  ;;  %p951_p4 = scmp.lt.s32.totalorder %s619_s16, %s619_s16 }
 0x4f9   : > { %p952_p7 = scmp.lt.s32.totalorder %s950_s21, %s944_s24 }
 0x4fa   : > { %p946_p13 = pnand %p945_p10, %p1367_p11 }
 0x4fb   : > { %p953_p8 = por %p952_p7, %p951_p4 }
 0x4fc   : > { %p947_p1 = pneg %p946_p13 }
 0x4fe   : > { %p954_p12 = pnand %p953_p8, %p947_p1 }
 0x500   : > { %957 = shalt.err (!%p954_p12)
}
 0x501   : > { %s958_s28 = scalar_lea.hbm %s1351_s9, 16  ;;  %p1368_p3 = pmov %p1366_p9 }
 0x502   : > { %p959_p0 = scmp.ne.s32.totalorder %s1351_s9, %s958_s28  ;;  %p964_p6 = scmp.lt.u32.totalorder %s958_s28, %s1351_s9 }
 0x504   : > { %p960_p2 = pnand %p959_p0, %p1368_p3 }
 0x506   : > { %p961_p5 = pneg %p960_p2 }
 0x508   : > { %p966_p9 = pnand %p964_p6, %p961_p5 }
 0x50a   : > { %969 = shalt.err (!%p966_p9)
}
 0x50b   : > { %p1369_p10 = pmov %p1368_p3  ;;  %s716_s17 = sshll.u32 %s1127_s13, 4 }
 0x50c   : > { %s596_s22 = sshll.u32 %s1203_s14, 4  ;;  %s1292_s26 = scalar_lea.hbm %s1349_s7, %s716_s17  ;;  %s1294_s22 = int_to_ptr.vmem [resolvable:$true] %s596_s22 }
 0x50d   : > { %812 = dma.vmem_to_hbm [thread:$0]  (%p1369_p10), %s619_s16, 16, %s1351_s9, [#allocation7]  }
 0x50e   : > { %s584_s16 = scalar_lea.sflag [#allocation4], %s326_s27  ;;  %s970_s29 = scalar_lea.vmem %s1294_s22, 16 }
 0x50f   : > { %p971_p11 = scmp.ne.s32.totalorder %s1294_s22, %s970_s29  ;;  %p1370_p13 = scmp.ne.s32.totalorder %s1356_s19, 0 }
 0x510   : > { %s1055_s23 = smov [#allocation5]  }
 0x511   : > { %p972_p1 = pnand %p971_p11, %p1370_p13  ;;  %s974_s24 = sshll.u32 %s1055_s23, 4  ;;  %s975_s24 = int_to_ptr.vmem [resolvable:$false] %s974_s24 }
 0x512   : > { %s976_s21 = scalar_lea.vmem %s975_s24, 32  ;;  %p977_p7 = scmp.lt.s32.totalorder %s1294_s22, %s975_s24 }
 0x513   : > { %p973_p4 = pneg %p972_p1  ;;  %p978_p8 = scmp.lt.s32.totalorder %s976_s21, %s970_s29 }
 0x515   : > { %p979_p12 = por %p978_p8, %p977_p7 }
 0x517   : > { %p980_p0 = pnand %p979_p12, %p973_p4 }
 0x575   : > { %v570_v63 = vpop.xlane.xlu1 %569 }
 0x576   : > { %888 = vlog2.f32 %v570_v63 }
 0x580   : > { %v889_v0 = vpop.eup %888 }
 0x581   : > { %v572_v1 = vmul.f32 0.6931472, %v889_v0 }
 0x583   : > { %v573_v2 = vsub.f32 %v565_v58, %v572_v1 }
 0x585   : > { %574 = vst.msk [vmem:[%s1203_s14] sm:$0x1] %vm561_vm9, %v573_v2 }
 0x586   : > { %983 = shalt.err (!%p980_p0)
}
 0x587   : > { %s984_s27 = scalar_lea.hbm %s1292_s26, 16  ;;  %s988_s28 = scalar_lea.hbm %s1349_s7, 128 }
 0x588   : > { %p985_p3 = scmp.ne.s32.totalorder %s1292_s26, %s984_s27  ;;  %p989_p6 = scmp.lt.u32.totalorder %s1292_s26, %s1349_s7 }
 0x589   : > { %p990_p9 = scmp.lt.u32.totalorder %s988_s28, %s984_s27  ;;  %p992_p11 = scmp.lt.u32.totalorder %s984_s27, %s1292_s26 }
 0x58a   : > { %p986_p2 = pnand %p985_p3, %p1370_p13 }
 0x58b   : > { %p991_p10 = por %p990_p9, %p989_p6 }
 0x58c   : > { %p987_p5 = pneg %p986_p2 }
 0x58d   : > { %p993_p1 = por %p992_p11, %p991_p10 }
 0x58f   : > { %p994_p4 = pnand %p993_p1, %p987_p5 }
 0x591   : > { %997 = shalt.err (!%p994_p4)
}
 0x592   : > { %808 = dma.vmem_to_hbm [thread:$0]  (%p1370_p13), %s1294_s22, 16, %s1292_s26, %s584_s16  }
 0x593   : > { %p1371_p7 = scmp.eq.s32.totalorder %s1127_s13, 7 }
 0x595   : > { %1019 = dma.done.wait (%p1371_p7), [#allocation7], 32   ;;  %p1372_p8 = pmov %p1371_p7 }
 0x597   : > { %1021 = vsyncadd (%p1372_p8), [#allocation7], 4294967264 }
 0x598 PF: > { %p832_p12 = scmp.ge.s32.totalorder %s1040_s12, 2  ;;  %s638_s29 = sand.u32 1, %s1028_s30  }
 0x599   : > { %p1373_p0 = scmp.ne.s32.totalorder %s1357_s20, 0  ;;  %s639_s24 = scalar_lea.sflag [#allocation4], %s638_s29 }
 0x59b   : > { %p823_p3 = pnand %p832_p12, %p1373_p0 }
 0x59d   : > { %1023 = dma.done.wait (!%p823_p3), %s639_s24, 16  }
 0x59e   : > { %1025 = vsyncadd (!%p823_p3), %s639_s24, 4294967280  ;;  %p22_p13 = scmp.ge.s32.totalorder %s1131_s15, 10   ;;  %s1374_s30 = smov %s1032_s10 }
 0x59f   : > { %s1375_s10 = smov %s1036_s11  ;;  %s1376_s11 = smov %s1142_s18 }
 0x5a0   : > { %s1377_s12 = smov %s1131_s15  ;;  %24 = sbr.rel (!%p22_p13) target bundleno = 5 (0x5), region = 108 }
 0x5a7   :  { %643 = vsyncpa [#allocation3], 1 }
 0x5a8   :  { %645 = vsyncpa [#allocation3 + $0x1], 1 }
 0x5a9   :  { %646 = vsyncpa [#allocation4], 1 }
 0x5aa   :  { %648 = vsyncpa [#allocation4 + $0x1], 1 }
 0x5ab   :  { %649 = vsyncpa [#allocation7], 1 }

</bundles_post_ra>
